<compile_context>
chip_gen: v6e
topology: v6e:2x2x1
jax: 0.10.0
libtpu: 0.0.40
codegen_flags: <defaults>
</compile_context>

<pallas_src>
import jax
import jax.numpy as jnp
from jax import lax
from jax.experimental import pallas as pl
from jax.experimental.pallas import tpu as pltpu

_LN_EPS = 1e-5
_INV_SQRT2 = 0.7071067811865475


def _round_up(x, m):
    return (x + m - 1) // m * m


def _pick_token_tile(HW, C, itemsize, budget_bytes=4 * 1024 * 1024):
    """Pick a 128-aligned lane tile that minimizes padding (prefer larger),
    keeping a double-buffered input tile under a small VMEM budget."""
    max_t = max(128, min(2048, _round_up(HW, 128)))
    cands = [c for c in range(128, max_t + 1, 128)
             if 2 * C * c * itemsize <= budget_bytes]
    if not cands:
        cands = [128]
    return min(cands, key=lambda c: (_round_up(HW, c) - HW, -c))


def _geglu_kernel(x_ref, wt_ref, bt_ref, o_ref):
    # x_ref : (1, C, T)        input tile, channels on sublanes / tokens on lanes
    # wt_ref: (2*out_p, C)     bf16, LN-affine pre-folded, value half on top
    # bt_ref: (2*out_p, 1)     f32 fused bias
    # o_ref : (1, out_ch, T)   output tile already in channel-major layout
    out_p = wt_ref.shape[0] // 2
    out_ch = o_ref.shape[1]

    x = x_ref[0].astype(jnp.float32)                       # (C, T)

    # LayerNorm over channels (biased variance, eps inside rsqrt).  gamma/beta
    # are already folded into wt/bt, so only the normalization happens here.
    mean = jnp.mean(x, axis=0, keepdims=True)              # (1, T)
    xc = x - mean
    var = jnp.mean(xc * xc, axis=0, keepdims=True)         # (1, T)
    xn = xc * lax.rsqrt(var + _LN_EPS)                     # (C, T)

    # Single fused projection on the MXU: (2*out_p, C) @ (C, T) -> (2*out_p, T)
    proj = jnp.dot(wt_ref[...], xn.astype(jnp.bfloat16),
                   preferred_element_type=jnp.float32) + bt_ref[...]

    val = proj[:out_p]                                     # (out_p, T)
    gate = proj[out_p:]                                    # (out_p, T)

    # Exact (erf) GELU, matching torch.nn.functional.gelu's default.
    gelu_gate = 0.5 * gate * (1.0 + lax.erf(gate * _INV_SQRT2))
    res = val * gelu_gate                                  # (out_p, T)

    o_ref[0] = res[:out_ch].astype(o_ref.dtype)


def geglu_pallas(x, gamma, beta, w, b):
    """x: (B, C, H, W).  gamma/beta: (C,).  w: (C, 2*out_ch).  b: (2*out_ch,).

    Returns (B, out_ch, H, W), matching the PyTorch GEGLU.forward.
    """
    B, C, H, W = x.shape
    HW = H * W
    out_ch = w.shape[1] // 2
    out_p = _round_up(out_ch, 8)      # sublane-aligned half width for the split

    # ---- one-time parameter prep (wrapper-side, outside the hot loop) -------
    # Fold LayerNorm affine into the projection:
    #   (xn*gamma + beta) @ W + b == xn @ (gamma[:,None]*W) + (beta @ W + b)
    w_f = gamma[:, None].astype(jnp.float32) * w.astype(jnp.float32)
    b_f = beta.astype(jnp.float32) @ w.astype(jnp.float32) + b.astype(jnp.float32)

    w1, w2 = w_f[:, :out_ch], w_f[:, out_ch:]
    b1, b2 = b_f[:out_ch], b_f[out_ch:]
    if out_p != out_ch:
        padc = out_p - out_ch
        w1 = jnp.pad(w1, ((0, 0), (0, padc)))
        w2 = jnp.pad(w2, ((0, 0), (0, padc)))
        b1 = jnp.pad(b1, (0, padc))
        b2 = jnp.pad(b2, (0, padc))
    # Transposed fused weight so the matmul output is channel-major already.
    wt = jnp.concatenate([w1, w2], axis=1).T.astype(jnp.bfloat16)   # (2*out_p, C)
    bt = jnp.concatenate([b1, b2]).reshape(2 * out_p, 1).astype(jnp.float32)

    # ---- spatial-token tiling (lane dim) ------------------------------------
    x3 = x.reshape(B, C, HW)
    t_hw = _pick_token_tile(HW, C, jnp.dtype(x.dtype).itemsize)
    HW_p = _round_up(HW, t_hw)
    if HW_p != HW:
        x3 = jnp.pad(x3, ((0, 0), (0, 0), (0, HW_p - HW)))

    grid = (B, HW_p // t_hw)

    itemsize = jnp.dtype(x.dtype).itemsize
    cost = pl.CostEstimate(
        flops=2 * B * HW_p * C * 2 * out_p + 8 * B * HW_p * (C + out_p),
        transcendentals=B * HW_p * out_p,
        bytes_accessed=(B * C * HW_p * itemsize            # x in
                        + B * out_ch * HW_p * itemsize     # out
                        + 2 * out_p * C * 2))              # weights (bf16)

    out3 = pl.pallas_call(
        _geglu_kernel,
        out_shape=jax.ShapeDtypeStruct((B, out_ch, HW_p), x.dtype),
        grid_spec=pltpu.PrefetchScalarGridSpec(
            num_scalar_prefetch=0,
            grid=grid,
            in_specs=[
                pl.BlockSpec((1, C, t_hw), lambda bi, ti: (bi, 0, ti)),   # x tile
                pl.BlockSpec((2 * out_p, C), lambda bi, ti: (0, 0)),      # fused W^T
                pl.BlockSpec((2 * out_p, 1), lambda bi, ti: (0, 0)),      # fused bias
            ],
            out_specs=pl.BlockSpec((1, out_ch, t_hw), lambda bi, ti: (bi, 0, ti)),
        ),
        compiler_params=pltpu.CompilerParams(
            dimension_semantics=("parallel", "parallel"),
            vmem_limit_bytes=32 * 1024 * 1024),
        cost_estimate=cost,
    )(x3, wt, bt)

    if HW_p != HW:
        out3 = out3[..., :HW]
    return out3.reshape(B, out_ch, H, W)


def geglu_reference(x, gamma, beta, w, b):
    """Pure-JAX f32 reference mirroring the PyTorch forward exactly."""
    B, C, H, W = x.shape
    out_ch = w.shape[1] // 2
    t = jnp.transpose(x.reshape(B, C, H * W), (0, 2, 1))   # (B, HW, C)
    mean = jnp.mean(t, axis=-1, keepdims=True)
    var = jnp.mean((t - mean) ** 2, axis=-1, keepdims=True)
    tn = (t - mean) / jnp.sqrt(var + _LN_EPS) * gamma + beta
    y = tn @ w + b
    v, g = y[..., :out_ch], y[..., out_ch:]
    out = v * (0.5 * g * (1.0 + lax.erf(g * _INV_SQRT2)))
    return jnp.transpose(out, (0, 2, 1)).reshape(B, out_ch, H, W)


def _run_case(key, B, C, H, W, out_ch):
    kx, kw, kb, kg, kbeta = jax.random.split(key, 5)
    x = jax.random.normal(kx, (B, C, H, W), dtype=jnp.float32)
    gamma = 1.0 + 0.1 * jax.random.normal(kg, (C,), jnp.float32)
    beta = 0.05 * jax.random.normal(kbeta, (C,), jnp.float32)
    w = (jax.random.normal(kw, (C, 2 * out_ch), jnp.float32)
         * (1.0 / jnp.sqrt(C)))
    b = jax.random.normal(kb, (2 * out_ch,), jnp.float32) * 0.01

    out = jax.block_until_ready(geglu_pallas(x, gamma, beta, w, b))
    ref = geglu_reference(x, gamma, beta, w, b)
    assert out.shape == (B, out_ch, H, W)
    # Tolerance accounts for the bf16 MXU matmul (f32 accumulate) vs f32 ref.
    assert jnp.allclose(out, ref, atol=5e-2, rtol=5e-2), "mismatch vs reference"


if __name__ == "__main__":
    key = jax.random.PRNGKey(0)
    k1, k2 = jax.random.split(key)

    # Main case: 128-aligned token count, square split.
    _run_case(k1, B=2, C=32, H=16, W=16, out_ch=32)
    # Ragged case: HW=100 needs token padding; out_ch=20 exercises the
    # 8-aligned sublane split (out_p=24) + narrow output store.
    _run_case(k2, B=2, C=32, H=10, W=10, out_ch=20)

    print("KERNEL_OK")
</pallas_src>

<mosaic_0001>
module attributes {stable_mosaic.version = 11 : i64} {
  func.func @_geglu_kernel(%arg0: i32, %arg1: i32, %arg2: memref<1x32x256xf32, #tpu.memory_space<vmem>>, %arg3: memref<64x32xbf16, #tpu.memory_space<vmem>>, %arg4: memref<64x1xf32, #tpu.memory_space<vmem>>, %arg5: memref<1x32x256xf32, #tpu.memory_space<vmem>>) attributes {dimension_semantics = [#tpu.dimension_semantics<parallel>, #tpu.dimension_semantics<parallel>], iteration_bounds = array<i64: 2, 1>, scalar_prefetch = 0 : i64, scratch_operands = 0 : i64, tpu.core_type = #tpu.core_type<tc>, window_params = [{transform_indices = @transform_0, window_bounds = array<i64: 1, 32, 256>}, {pipeline_mode = #tpu.pipeline_mode<synchronous>, transform_indices = @transform_1, window_bounds = array<i64: 64, 32>}, {pipeline_mode = #tpu.pipeline_mode<synchronous>, transform_indices = @transform_2, window_bounds = array<i64: 64, 1>}, {transform_indices = @transform_3, window_bounds = array<i64: 1, 32, 256>}]} {
    %c0 = arith.constant 0 : index
    %c0_0 = arith.constant 0 : index
    %c0_1 = arith.constant 0 : index
    %0 = vector.load %arg2[%c0, %c0_0, %c0_1] : memref<1x32x256xf32, #tpu.memory_space<vmem>>, vector<1x32x256xf32>
    %1 = vector.shape_cast %0 : vector<1x32x256xf32> to vector<32x256xf32>
    %cst = arith.constant dense<0.000000e+00> : vector<256xf32>
    %2 = vector.multi_reduction <add>, %1, %cst [0] : vector<32x256xf32> to vector<256xf32>
    %3 = vector.shape_cast %2 : vector<256xf32> to vector<1x256xf32>
    %cst_2 = arith.constant 3.200000e+01 : f32
    %4 = vector.broadcast %cst_2 : f32 to vector<1x256xf32>
    %5 = arith.divf %3, %4 : vector<1x256xf32>
    %6 = vector.broadcast %5 : vector<1x256xf32> to vector<32x256xf32>
    %7 = arith.subf %1, %6 : vector<32x256xf32>
    %8 = arith.mulf %7, %7 : vector<32x256xf32>
    %cst_3 = arith.constant dense<0.000000e+00> : vector<256xf32>
    %9 = vector.multi_reduction <add>, %8, %cst_3 [0] : vector<32x256xf32> to vector<256xf32>
    %10 = vector.shape_cast %9 : vector<256xf32> to vector<1x256xf32>
    %cst_4 = arith.constant 3.200000e+01 : f32
    %11 = vector.broadcast %cst_4 : f32 to vector<1x256xf32>
    %12 = arith.divf %10, %11 : vector<1x256xf32>
    %cst_5 = arith.constant 9.99999974E-6 : f32
    %13 = vector.broadcast %cst_5 : f32 to vector<1x256xf32>
    %14 = arith.addf %12, %13 : vector<1x256xf32>
    %15 = math.rsqrt %14 : vector<1x256xf32>
    %16 = vector.broadcast %15 : vector<1x256xf32> to vector<32x256xf32>
    %17 = arith.mulf %7, %16 : vector<32x256xf32>
    %c0_6 = arith.constant 0 : index
    %c0_7 = arith.constant 0 : index
    %18 = vector.load %arg3[%c0_6, %c0_7] : memref<64x32xbf16, #tpu.memory_space<vmem>>, vector<64x32xbf16>
    %19 = arith.truncf %17 : vector<32x256xf32> to vector<32x256xbf16>
    %cst_8 = arith.constant dense<0.000000e+00> : vector<64x256xf32>
    %20 = tpu.matmul %18, %19, %cst_8 {dimension_numbers = #tpu.dot_dimension_numbers<[1], [0], [0], [1], [0, 0, 1, 1], [], []>} : vector<64x32xbf16>, vector<32x256xbf16>, vector<64x256xf32> -> vector<64x256xf32>
    %c0_9 = arith.constant 0 : index
    %c0_10 = arith.constant 0 : index
    %21 = vector.load %arg4[%c0_9, %c0_10] : memref<64x1xf32, #tpu.memory_space<vmem>>, vector<64x1xf32>
    %22 = vector.broadcast %21 : vector<64x1xf32> to vector<64x256xf32>
    %23 = arith.addf %20, %22 : vector<64x256xf32>
    %24 = vector.extract_strided_slice %23 {offsets = [0, 0], sizes = [32, 256], strides = [1, 1]} : vector<64x256xf32> to vector<32x256xf32>
    %25 = vector.extract_strided_slice %23 {offsets = [32, 0], sizes = [32, 256], strides = [1, 1]} : vector<64x256xf32> to vector<32x256xf32>
    %cst_11 = arith.constant 5.000000e-01 : f32
    %26 = vector.broadcast %cst_11 : f32 to vector<32x256xf32>
    %27 = arith.mulf %26, %25 : vector<32x256xf32>
    %cst_12 = arith.constant 0.707106769 : f32
    %28 = vector.broadcast %cst_12 : f32 to vector<32x256xf32>
    %29 = arith.mulf %25, %28 : vector<32x256xf32>
    %30 = math.erf %29 : vector<32x256xf32>
    %cst_13 = arith.constant 1.000000e+00 : f32
    %31 = vector.broadcast %cst_13 : f32 to vector<32x256xf32>
    %32 = arith.addf %31, %30 : vector<32x256xf32>
    %33 = arith.mulf %27, %32 : vector<32x256xf32>
    %34 = arith.mulf %24, %33 : vector<32x256xf32>
    %c0_14 = arith.constant 0 : index
    %c0_15 = arith.constant 0 : index
    %c0_16 = arith.constant 0 : index
    %35 = vector.load %arg5[%c0_14, %c0_15, %c0_16] : memref<1x32x256xf32, #tpu.memory_space<vmem>>, vector<1x32x256xf32>
    %36 = vector.shape_cast %35 : vector<1x32x256xf32> to vector<32x256xf32>
    %37 = vector.shape_cast %34 : vector<32x256xf32> to vector<1x32x256xf32>
    tpu.vector_store %arg5[%c0_14, %c0_15, %c0_16], %37 {strides = array<i32>} : memref<1x32x256xf32, #tpu.memory_space<vmem>>, vector<1x32x256xf32>,
    return
  }
  func.func @transform_0(%arg0: i32, %arg1: i32) -> (i32, i32, i32) {
    %c0_i32 = arith.constant 0 : i32
    %c0_i32_0 = arith.constant 0 : i32
    return %arg0, %c0_i32, %arg1 : i32, i32, i32
  }
  func.func @transform_1(%arg0: i32, %arg1: i32) -> (i32, i32) {
    %c0_i32 = arith.constant 0 : i32
    %c0_i32_0 = arith.constant 0 : i32
    %c0_i32_1 = arith.constant 0 : i32
    return %c0_i32, %c0_i32_0 : i32, i32
  }
  func.func @transform_2(%arg0: i32, %arg1: i32) -> (i32, i32) {
    %c0_i32 = arith.constant 0 : i32
    %c0_i32_0 = arith.constant 0 : i32
    %c0_i32_1 = arith.constant 0 : i32
    return %c0_i32, %c0_i32_0 : i32, i32
  }
  func.func @transform_3(%arg0: i32, %arg1: i32) -> (i32, i32, i32) {
    %c0_i32 = arith.constant 0 : i32
    %c0_i32_0 = arith.constant 0 : i32
    return %arg0, %c0_i32, %arg1 : i32, i32, i32
  }
}

</mosaic_0001>

<bundles_post_ra>
// kernel: tpu_custom_call.1
= control target key start
LH: loop header
LB: loop body
LE: loop exit
PB: predicated region body
PF: predicated region fallthrough
CT: control target
= control target key end

     0   :  { %8 = vsyncpa [#allocation3], 0  ;;  %s1074_s0 = inlined_call_operand.hbm [shape: f32[2,32,256], index: 0, kind: input, shape index: {}]   ;;  %s1075_s1 = inlined_call_operand.vmem [shape: bf16[64,32], index: 1, kind: input, shape index: {}]   ;;  %s1076_s2 = inlined_call_operand.vmem [shape: f32[64,1], index: 2, kind: input, shape index: {}]   ;;  %s1077_s3 = inlined_call_operand.hbm [shape: f32[2,32,256], index: 3, kind: output, shape index: {}]  }
   0x1   :  { %10 = vsyncpa [#allocation3 + $0x1], 0 }
   0x2   :  { %11 = vsyncpa [#allocation4], 0 }
   0x3   :  { %13 = vsyncpa [#allocation4 + $0x1], 0  ;;  %s871_s12 = smov 0   ;;  %s873_s13 = smov 0  }
   0x4   :  { %s875_s14 = smov 0   ;;  %s877_s15 = smov 0  }
   0x5   :  { %s879_s16 = smov 0   ;;  %s881_s17 = smov 0  }
   0x6 LB: > { %s612_s18 = sadd.s32 4294967295, %s842_s17   ;;  %s613_s19 = sadd.s32 4294967294, %s842_s17   ;;  %s842_s17 = sphi %s881_s17, %s19_s17   ;;  %s838_s16 = sphi %s879_s16, %s1088_s16   ;;  %s834_s15 = sphi %s877_s15, %s1087_s15   ;;  %s830_s14 = sphi %s875_s14, %s1086_s14   ;;  %s826_s13 = sphi %s873_s13, %s1085_s13   ;;  %s822_s12 = sphi %s871_s12, %s1084_s12  }
   0x7   : > { %s31_s20 = sadd.s32 1, %s838_s16  ;;  %s40_s21 = sadd.s32 1, %s830_s14 }
   0x8   : > { %p33_p0 = scmp.ge.s32.totalorder %s31_s20, 2  ;;  %p47_p1 = scmp.ne.s32.totalorder %s830_s14, %s826_s13 }
   0x9   : > { %p48_p2 = scmp.eq.s32.totalorder %s842_s17, 0  ;;  %p53_p3 = scmp.ne.s32.totalorder %s826_s13, %s822_s12 }
   0xa   : > { %s1090_s20 = smov (%p33_p0, %s31_s20), 0  ;;  %p54_p5 = scmp.eq.s32.totalorder %s612_s18, 0 }
   0xb   : > { %p912_p4 = por %p48_p2, %p47_p1  ;;  %s35_s23 = ssub.s32 %s838_s16, %s1090_s20 }
   0xc   : > { %p121_p6 = scmp.eq.s32.totalorder %s612_s18, 1  ;;  %p38_p7 = scmp.eq.s32.totalorder %s35_s23, 0 }
   0xd   : > { %p918_p8 = por %p54_p5, %p53_p3  ;;  %p127_p10 = scmp.eq.s32.totalorder %s613_s19, 1 }
   0xe   : > { %p922_p9 = por %p121_p6, %p47_p1  ;;  %p653_p13 = scmp.lt.s32.totalorder %s842_s17, 2 }
   0xf   : > { %s927_s26 = scalar_select %p38_p7, %s830_s14, %s40_s21  }
  0x10   : > { %p929_p11 = por %p127_p10, %p53_p3  ;;  %s153_s28 = sand.u32 1, %s830_s14  }
  0x11   : > { %s616_s29 = sshll.u32 %s153_s28, 6  ;;  %s635_s30 = sshll.u32 %s838_s16, 10 }
  0x12   : > { %s165_s6 = scalar_lea.hbm %s1074_s0, %s635_s30  ;;  %s157_s7 = scalar_lea.vmem [#allocation2], %s616_s29 }
  0x13   : > { %s166_s8 = sshll.u32 %s157_s7, 4  ;;  %p942_p0 = pnand %p653_p13, %p912_p4  ;;  %s167_s8 = int_to_ptr.vmem [resolvable:$true] %s166_s8 }
  0x14   : > { %p619_p1 = scmp.ge.s32.totalorder %s842_s17, 1  ;;  %s154_s10 = scalar_lea.sflag [#allocation3], %s153_s28 }
  0x15   : > { %p736_p2 = pneg %p942_p0  ;;  %s747_s11 = scalar_lea.vmem %s167_s8, 1024 }
  0x16   : > { %p748_p3 = scmp.ne.s32.totalorder %s167_s8, %s747_s11  ;;  %s844_s18 = smov [#allocation2]  }
  0x17   : > { %s752_s19 = sshll.u32 %s844_s18, 4  ;;  %s753_s19 = int_to_ptr.vmem [resolvable:$false] %s752_s19 }
  0x18   : > { %p750_p5 = pnand %p748_p3, %p736_p2  ;;  %s754_s21 = scalar_lea.vmem %s753_s19, 2048 }
  0x19   : > { %p755_p7 = scmp.lt.s32.totalorder %s167_s8, %s753_s19  ;;  %p756_p10 = scmp.lt.s32.totalorder %s754_s21, %s747_s11 }
  0x1a   : > { %p751_p6 = pneg %p750_p5 }
  0x1b   : > { %p757_p12 = por %p756_p10, %p755_p7 }
  0x1d   : > { %p758_p4 = pnand %p757_p12, %p751_p6 }
  0x1f   : > { %761 = shalt.err (!%p758_p4)
}
  0x20   : > { %s845_s22 = smov 256   ;;  %s846_s23 = smov 16  }
  0x21   : > { %648 = dma.hbm_to_vmem [thread:$0]  (!%p942_p0), %s165_s6, 1024, %s167_s8, %s154_s10, %s845_s22, %s845_s22, %s846_s23  }
  0x22   : > { %p174_p13 = scmp.lt.s32.totalorder %s842_s17, 3 }
  0x24   : > { %p175_p2 = pnand %p619_p1, %p174_p13 }
  0x25   : > { %s955_s28 = sand.u32 (!%p175_p2), 1, %s826_s13  }
  0x26   : > { %178 = sbr.rel (%p175_p2) target bundleno = 362 (0x16a), region = 32  ;;  %s620_s29 = sshll.u32 (!%p175_p2), %s955_s28, 6 }
  0x27   : > { %s181_s30 = scalar_lea.sflag (!%p175_p2), [#allocation3], %s955_s28  ;;  %s184_s4 = scalar_lea.vmem (!%p175_p2), [#allocation2], %s620_s29 }
  0x2b   : > { %813 = dma.done.wait (%p918_p8), %s181_s30, 1024  }
  0x2c   : > { %815 = vsyncadd (%p918_p8), %s181_s30, 4294966272  ;;  %v847_v0 = vmov 0   ;;  %v211_v1 = vld [vmem:[%s184_s4 + $0x8] sm:$0xff]  ;;  %v213_v2 = vld [vmem:[%s184_s4 + $0x18] sm:$0xff]  ;;  %vm367_vm0 = vcmask 261120   ;;  %s1009_s19 = scalar_lea.vmem [#allocation5], %s620_s29 }
  0x2d   : > { %412 = vmatprep.mubr.bf16.mxu0 %v847_v0  ;;  %432 = vmatprep.mubr.bf16.mxu1 %v847_v0  ;;  %v215_v3 = vld [vmem:[%s184_s4 + $0x28] sm:$0xff]  ;;  %v227_v4 = vadd.f32 %v213_v2, %v211_v1  ;;  %v210_v5 = vld [vmem:[%s184_s4] sm:$0xff]  ;;  %v212_v6 = vld [vmem:[%s184_s4 + $0x10] sm:$0xff]  ;;  %s636_s29 = sshll.u32 %s834_s15, 10  ;;  %s525_s21 = sshll.u32 %s1009_s19, 4  ;;  %s1024_s21 = int_to_ptr.vmem [resolvable:$true] %s525_s21 }
  0x2e   : > { %709 = vset.pattern.permute.xlu1 %v847_v0  ;;  %708 = vset.pattern.permute.xlu0 %v847_v0  ;;  %v217_v7 = vld [vmem:[%s184_s4 + $0x38] sm:$0xff]  ;;  %v214_v8 = vld [vmem:[%s184_s4 + $0x20] sm:$0xff]  ;;  %v218_v9 = vadd.f32 %v212_v6, %v210_v5  ;;  %v216_v11 = vld [vmem:[%s184_s4 + $0x30] sm:$0xff]  ;;  %s1022_s30 = scalar_lea.hbm %s1077_s3, %s636_s29  ;;  %s510_s15 = scalar_lea.sflag [#allocation4], %s955_s28 }
  0x2f   : > { %v228_v10 = vadd.f32 %v227_v4, %v215_v3  ;;  %v305_v15 = vld [vmem:[%s1076_s2 + $0x30] sm:$0xff]  ;;  %v303_v17 = vld [vmem:[%s1076_s2 + $0x20] sm:$0xff]  ;;  %v306_v19 = vld [vmem:[%s1076_s2 + $0x38] sm:$0xff]  ;;  %s762_s4 = scalar_lea.vmem %s1024_s21, 1024  ;;  %s848_s24 = smov [#allocation5]  }
  0x30   : > { %v219_v12 = vadd.f32 %v218_v9, %v214_v8  ;;  %339 = vperm.xlu1 %709, %v305_v15   ;;  %329 = vperm.xlu0 %708, %v303_v17   ;;  %v304_v21 = vld [vmem:[%s1076_s2 + $0x28] sm:$0xff]  ;;  %v299_v27 = vld [vmem:[%s1076_s2] sm:$0xff]  ;;  %v302_v31 = vld [vmem:[%s1076_s2 + $0x18] sm:$0xff]  ;;  %p763_p8 = scmp.ne.s32.totalorder %s1024_s21, %s762_s4  ;;  %s766_s5 = sshll.u32 %s848_s24, 4  ;;  %s767_s5 = int_to_ptr.vmem [resolvable:$false] %s766_s5 }
  0x31   : > { %v229_v13 = vadd.f32 %v228_v10, %v217_v7  ;;  %v300_v25 = vld [vmem:[%s1076_s2 + $0x8] sm:$0xff]  ;;  %v301_v33 = vld [vmem:[%s1076_s2 + $0x10] sm:$0xff]  ;;  %s768_s6 = scalar_lea.vmem %s767_s5, 2048  ;;  %p769_p1 = scmp.lt.s32.totalorder %s1024_s21, %s767_s5 }
  0x32   : > { %v220_v14 = vadd.f32 %v219_v12, %v216_v11  ;;  %p764_p12 = pnand %p763_p8, %p922_p9  ;;  %p770_p3 = scmp.lt.s32.totalorder %s768_s6, %s762_s4 }
  0x33   : > { %v230_v16 = vrot.slane %v229_v13, 4 }
  0x34   : > { %v221_v18 = vrot.slane %v220_v14, 4  ;;  %344 = vperm.xlu1 %709, %v306_v19   ;;  %334 = vperm.xlu0 %708, %v304_v21   ;;  %p765_p0 = pneg %p764_p12  ;;  %p771_p5 = por %p770_p3, %p769_p1 }
  0x35   : > { %v231_v20 = vadd.f32 %v230_v16, %v229_v13 }
  0x36   : > { %v222_v22 = vadd.f32 %v221_v18, %v220_v14  ;;  %p772_p6 = pnand %p771_p5, %p765_p0 }
  0x37   : > { %v232_v23 = vrot.slane %v231_v20, 2 }
  0x38   : > { %v223_v24 = vrot.slane %v222_v22, 2  ;;  %314 = vperm.xlu1 %709, %v300_v25   ;;  %309 = vperm.xlu0 %708, %v299_v27   ;;  %v711_v27 = vld [vmem:[%s1075_s1 + $0x10] sm:$0xff]  }
  0x39   : > { %v233_v26 = vadd.f32 %v232_v23, %v231_v20 }
  0x3a   : > { %v224_v28 = vadd.f32 %v223_v24, %v222_v22 }
  0x3b   : > { %v234_v29 = vrot.slane %v233_v26, 1 }
  0x3c   : > { %v225_v30 = vrot.slane %v224_v28, 1  ;;  %324 = vperm.xlu1 %709, %v302_v31   ;;  %319 = vperm.xlu0 %708, %v301_v33  }
  0x3d   : > { %v235_v32 = vadd.f32 %v234_v29, %v233_v26  ;;  %v710_v26 = vld [vmem:[%s1075_s1] sm:$0xff]   ;;  %v713_v29 = vld [vmem:[%s1075_s1 + $0x18] sm:$0xff]  }
  0x3e   : > { %v226_v34 = vadd.f32 %v225_v30, %v224_v28  ;;  %v712_v28 = vld [vmem:[%s1075_s1 + $0x8] sm:$0xff]  }
  0x3f   : > { %v238_v35 = vmul.f32 0.03125, %v235_v32 }
  0x40   : > { %v237_v36 = vmul.f32 0.03125, %v226_v34 }
  0x41   : > { %v240_v37 = vsub.f32 %v211_v1, %v238_v35  ;;  %v242_v38 = vsub.f32 %v213_v2, %v238_v35  ;;  %v244_v39 = vsub.f32 %v215_v3, %v238_v35  ;;  %v246_v40 = vsub.f32 %v217_v7, %v238_v35 }
  0x42   : > { %v239_v41 = vsub.f32 %v210_v5, %v237_v36  ;;  %v241_v42 = vsub.f32 %v212_v6, %v237_v36  ;;  %v243_v43 = vsub.f32 %v214_v8, %v237_v36  ;;  %v245_v44 = vsub.f32 %v216_v11, %v237_v36 }
  0x43   : > { %v248_v45 = vmul.f32 %v240_v37, %v240_v37  ;;  %v250_v46 = vmul.f32 %v242_v38, %v242_v38  ;;  %v252_v47 = vmul.f32 %v244_v39, %v244_v39  ;;  %v254_v51 = vmul.f32 %v246_v40, %v246_v40 }
  0x44   : > { %v247_v48 = vmul.f32 %v239_v41, %v239_v41  ;;  %v249_v49 = vmul.f32 %v241_v42, %v241_v42  ;;  %v251_v50 = vmul.f32 %v243_v43, %v243_v43  ;;  %v253_v53 = vmul.f32 %v245_v44, %v245_v44 }
  0x45   : > { %v264_v52 = vadd.f32 %v250_v46, %v248_v45 }
  0x46   : > { %v255_v54 = vadd.f32 %v249_v49, %v247_v48 }
  0x47   : > { %v265_v55 = vadd.f32 %v264_v52, %v252_v47 }
  0x48   : > { %v256_v56 = vadd.f32 %v255_v54, %v251_v50 }
  0x49   : > { %v266_v57 = vadd.f32 %v265_v55, %v254_v51 }
  0x4a   : > { %v257_v58 = vadd.f32 %v256_v56, %v253_v53 }
  0x4b   : > { %v267_v59 = vrot.slane %v266_v57, 4 }
  0x4c   : > { %v258_v60 = vrot.slane %v257_v58, 4 }
  0x4d   : > { %v268_v61 = vadd.f32 %v267_v59, %v266_v57 }
  0x4e   : > { %v259_v62 = vadd.f32 %v258_v60, %v257_v58 }
  0x4f   : > { %v269_v63 = vrot.slane %v268_v61, 2 }
  0x50   : > { %v260_v1 = vrot.slane %v259_v62, 2 }
  0x51   : > { %v270_v2 = vadd.f32 %v269_v63, %v268_v61 }
  0x52   : > { %v261_v3 = vadd.f32 %v260_v1, %v259_v62 }
  0x53   : > { %v271_v4 = vrot.slane %v270_v2, 1 }
  0x54   : > { %v262_v5 = vrot.slane %v261_v3, 1 }
  0x55   : > { %v272_v6 = vadd.f32 %v271_v4, %v270_v2 }
  0x56   : > { %v263_v7 = vadd.f32 %v262_v5, %v261_v3 }
  0x57   : > { %v274_v8 = vmul.f32 0.03125, %v272_v6 }
  0x58   : > { %v273_v9 = vmul.f32 0.03125, %v263_v7 }
  0x59   : > { %v276_v10 = vadd.f32 1e-05, %v274_v8 }
  0x5a   : > { %v275_v11 = vadd.f32 1e-05, %v273_v9 }
  0x5b   : > { %714 = vrsqrt.f32 %v276_v10 }
  0x5c   : > { %716 = vrsqrt.f32 %v275_v11 }
  0x68   : > { %v715_v12 = vpop.eup %714 }
  0x69   : > { %v717_v13 = vpop.eup %716  ;;  %v284_v14 = vmul.f32 %v715_v12, %v244_v39  ;;  %v286_v15 = vmul.f32 %v715_v12, %v246_v40  ;;  %v280_v16 = vmul.f32 %v715_v12, %v240_v37  ;;  %v282_v17 = vmul.f32 %v715_v12, %v242_v38 }
  0x6a   : > { %v283_v18 = vmul.f32 %v717_v13, %v243_v43  ;;  %v285_v19 = vmul.f32 %v717_v13, %v245_v44  ;;  %v279_v20 = vmul.f32 %v717_v13, %v239_v41  ;;  %v281_v21 = vmul.f32 %v717_v13, %v241_v42 }
  0x6b   : > { %v298_v22 = vpack.c.bf16 %v286_v15, %v284_v14  ;;  %v296_v23 = vpack.c.bf16 %v282_v17, %v280_v16 }
  0x6c   : > { %v297_v24 = vpack.c.bf16 %v285_v19, %v283_v18  ;;  %v295_v25 = vpack.c.bf16 %v281_v21, %v279_v20 }
  0x6d   : > { %392 = vmatprep.subr.bf16.mxu0 %v298_v22  ;;  %637 = vmatprep.subr.bf16.mxu1 %v298_v22 }
  0x6e   : > { %393 = vmatpush1.bf16.msra.mxu0 %v297_v24  ;;  %639 = vmatpush1.bf16.msra.mxu1 %v297_v24 }
  0x6f   : > { %394 = vmatprep.subr.bf16.mxu0 %v296_v23  ;;  %638 = vmatprep.subr.bf16.mxu1 %v296_v23 }
  0x72   : > { %395 = vmatpush1.bf16.msra.mxu0 %v295_v25  ;;  %640 = vmatpush1.bf16.msra.mxu1 %v295_v25 }
  0x75   : > { %626 = vmatmul.mubr.msk.bf16.vlgmr.msra.gmra.mxu0 %vm367_vm0, %v710_v26  ;;  %628 = vmatmul.mubr.msk.bf16.vlgmr.msra.gmra.mxu1 %vm367_vm0, %v711_v27 }
  0x76   : > { %422 = vmatprep.mubr.bf16.mxu0 %v847_v0  ;;  %442 = vmatprep.mubr.bf16.mxu1 %v847_v0 }
  0x7d   : > { %627 = vmatmul.mubr.msk.bf16.gmra.mxu0 %vm367_vm0, %v712_v28  ;;  %629 = vmatmul.mubr.msk.bf16.gmra.mxu1 %vm367_vm0, %v713_v29 }
  0xab   : > { %v330_v30 = vpop.permute.xlu0 %329  ;;  %v340_v41 = vpop.permute.xlu1 %339 }
  0xaf   : > { %v335_v35 = vpop.permute.xlu0 %334  ;;  %v345_v53 = vpop.permute.xlu1 %344 }
  0xb3   : > { %v310_v2 = vpop.permute.xlu0 %309  ;;  %v315_v14 = vpop.permute.xlu1 %314 }
  0xb7   : > { %v320_v23 = vpop.permute.xlu0 %319 }
 0x135   : > { %v434_v31 = vpop.f32.mrf.mxu1  ;;  %v414_v37 = vpop.f32.mrf.mxu0 }
 0x136   : > { %v435_v32 = vadd.f32 %v434_v31, %v330_v30  ;;  %v415_v7 = vadd.f32 %v414_v37, %v310_v2 }
 0x137   : > { %v436_v33 = vpop.f32.mrf.mxu1  ;;  %v416_v43 = vpop.f32.mrf.mxu0 }
 0x138   : > { %v461_v34 = vmul.f32 0.70710677, %v435_v32  ;;  %v437_v36 = vadd.f32 %v436_v33, %v330_v30  ;;  %v453_v62 = vmul.f32 0.5, %v435_v32  ;;  %v417_v9 = vadd.f32 %v416_v43, %v310_v2  ;;  %v325_v43 = vpop.permute.xlu1 %324 }
 0x139   : > { %v438_v38 = vpop.f32.mrf.mxu1  ;;  %v418_v51 = vpop.f32.mrf.mxu0 }
 0x13a   : > { %718 = verf.f32 %v461_v34  ;;  %v462_v0 = vmul.f32 0.70710677, %v437_v36  ;;  %v439_v39 = vadd.f32 %v438_v38, %v335_v35  ;;  %v454_v5 = vmul.f32 0.5, %v437_v36 }
 0x13b   : > { %v440_v40 = vpop.f32.mrf.mxu1  ;;  %v420_v58 = vpop.f32.mrf.mxu0  ;;  %v419_v18 = vadd.f32 %v418_v51, %v315_v14 }
 0x13c   : > { %720 = verf.f32 %v462_v0  ;;  %v463_v42 = vmul.f32 0.70710677, %v439_v39  ;;  %v441_v44 = vadd.f32 %v440_v40, %v335_v35  ;;  %v455_v11 = vmul.f32 0.5, %v439_v39 }
 0x13d   : > { %v444_v45 = vpop.f32.mrf.mxu1  ;;  %v424_v3 = vpop.f32.mrf.mxu0  ;;  %v421_v28 = vadd.f32 %v420_v58, %v315_v14 }
 0x13e   : > { %722 = verf.f32 %v463_v42  ;;  %v445_v46 = vadd.f32 %v444_v45, %v340_v41  ;;  %v464_v47 = vmul.f32 0.70710677, %v441_v44  ;;  %v456_v21 = vmul.f32 0.5, %v441_v44 }
 0x13f   : > { %v446_v48 = vpop.f32.mrf.mxu1  ;;  %v426_v15 = vpop.f32.mrf.mxu0  ;;  %v425_v31 = vadd.f32 %v424_v3, %v320_v23 }
 0x140   : > { %v465_v49 = vmul.f32 0.70710677, %v445_v46  ;;  %v447_v50 = vadd.f32 %v446_v48, %v340_v41  ;;  %724 = verf.f32 %v464_v47  ;;  %v457_v25 = vmul.f32 0.5, %v445_v46 }
 0x141   : > { %v448_v52 = vpop.f32.mrf.mxu1  ;;  %v428_v30 = vpop.f32.mrf.mxu0  ;;  %v427_v38 = vadd.f32 %v426_v15, %v320_v23 }
 0x142   : > { %726 = verf.f32 %v465_v49  ;;  %v466_v54 = vmul.f32 0.70710677, %v447_v50  ;;  %v449_v55 = vadd.f32 %v448_v52, %v345_v53  ;;  %v458_v33 = vmul.f32 0.5, %v447_v50 }
 0x143   : > { %v450_v56 = vpop.f32.mrf.mxu1  ;;  %v430_v42 = vpop.f32.mrf.mxu0  ;;  %v429_v47 = vadd.f32 %v428_v30, %v325_v43 }
 0x144   : > { %728 = verf.f32 %v466_v54  ;;  %v451_v57 = vadd.f32 %v450_v56, %v345_v53  ;;  %v467_v59 = vmul.f32 0.70710677, %v449_v55  ;;  %v459_v40 = vmul.f32 0.5, %v449_v55 }
 0x145   : > { %v431_v49 = vadd.f32 %v430_v42, %v325_v43 }
 0x146   : > { %v468_v60 = vmul.f32 0.70710677, %v451_v57  ;;  %730 = verf.f32 %v467_v59  ;;  %v460_v45 = vmul.f32 0.5, %v451_v57 }
 0x147   : > { %v719_v61 = vpop.eup %718 }
 0x148   : > { %v477_v63 = vadd.f32 1.0, %v719_v61  ;;  %732 = verf.f32 %v468_v60 }
 0x149   : > { %v721_v1 = vpop.eup %720 }
 0x14a   : > { %v485_v4 = vmul.f32 %v477_v63, %v453_v62  ;;  %v478_v6 = vadd.f32 1.0, %v721_v1 }
 0x14b   : > { %v723_v8 = vpop.eup %722 }
 0x14c   : > { %v486_v10 = vmul.f32 %v478_v6, %v454_v5  ;;  %v479_v12 = vadd.f32 1.0, %v723_v8  ;;  %v493_v13 = vmul.f32 %v485_v4, %v415_v7 }
 0x14d   : > { %v725_v16 = vpop.eup %724 }
 0x14e   : > { %v487_v17 = vmul.f32 %v479_v12, %v455_v11  ;;  %v494_v19 = vmul.f32 %v486_v10, %v417_v9  ;;  %501 = vst [vmem:[%s1009_s19] sm:$0xff] %v493_v13  ;;  %v480_v22 = vadd.f32 1.0, %v725_v16 }
 0x14f   : > { %v727_v20 = vpop.eup %726 }
 0x150   : > { %v495_v24 = vmul.f32 %v487_v17, %v419_v18  ;;  %502 = vst [vmem:[%s1009_s19 + $0x8] sm:$0xff] %v494_v19  ;;  %v481_v26 = vadd.f32 1.0, %v727_v20  ;;  %v488_v29 = vmul.f32 %v480_v22, %v456_v21 }
 0x151   : > { %v729_v27 = vpop.eup %728 }
 0x152   : > { %503 = vst [vmem:[%s1009_s19 + $0x10] sm:$0xff] %v495_v24  ;;  %v489_v32 = vmul.f32 %v481_v26, %v457_v25  ;;  %v482_v34 = vadd.f32 1.0, %v729_v27  ;;  %v496_v35 = vmul.f32 %v488_v29, %v421_v28 }
 0x153   : > { %v731_v36 = vpop.eup %730 }
 0x154   : > { %v497_v37 = vmul.f32 %v489_v32, %v425_v31  ;;  %v490_v0 = vmul.f32 %v482_v34, %v458_v33  ;;  %504 = vst [vmem:[%s1009_s19 + $0x18] sm:$0xff] %v496_v35  ;;  %v483_v41 = vadd.f32 1.0, %v731_v36 }
 0x155   : > { %v733_v39 = vpop.eup %732 }
 0x156   : > { %505 = vst [vmem:[%s1009_s19 + $0x20] sm:$0xff] %v497_v37  ;;  %v498_v44 = vmul.f32 %v490_v0, %v427_v38  ;;  %v484_v46 = vadd.f32 1.0, %v733_v39  ;;  %v491_v48 = vmul.f32 %v483_v41, %v459_v40 }
 0x158   : > { %506 = vst [vmem:[%s1009_s19 + $0x28] sm:$0xff] %v498_v44  ;;  %v492_v50 = vmul.f32 %v484_v46, %v460_v45  ;;  %v499_v51 = vmul.f32 %v491_v48, %v429_v47 }
 0x15a   : > { %v500_v52 = vmul.f32 %v492_v50, %v431_v49  ;;  %507 = vst [vmem:[%s1009_s19 + $0x30] sm:$0xff] %v499_v51 }
 0x15c   : > { %508 = vst [vmem:[%s1009_s19 + $0x38] sm:$0xff] %v500_v52 }
 0x15d   : > { %775 = shalt.err (!%p772_p6)
}
 0x15e   : > { %s776_s7 = scalar_lea.hbm %s1022_s30, 1024  ;;  %s780_s10 = scalar_lea.hbm %s1077_s3, 2048 }
 0x15f   : > { %p777_p7 = scmp.ne.s32.totalorder %s1022_s30, %s776_s7  ;;  %p781_p13 = scmp.lt.s32.totalorder %s1022_s30, %s1077_s3 }
 0x160   : > { %p782_p2 = scmp.lt.s32.totalorder %s780_s10, %s776_s7 }
 0x161   : > { %p778_p10 = pnand %p777_p7, %p922_p9 }
 0x162   : > { %p783_p8 = por %p782_p2, %p781_p13 }
 0x163   : > { %p779_p4 = pneg %p778_p10 }
 0x165   : > { %p784_p12 = pnand %p783_p8, %p779_p4 }
 0x167   : > { %787 = shalt.err (!%p784_p12)
}
 0x168   : > { %s849_s19 = smov 256   ;;  %s850_s29 = smov 16  }
 0x169   : > { %643 = dma.vmem_to_hbm [thread:$0]  (%p922_p9), %s1024_s21, 1024, %s1022_s30, %s510_s15, %s849_s19, %s849_s19, %s850_s29  }
 0x16a PF: > { %s540_s22 = sand.u32 1, %s822_s12   ;;  %p1083_p0 = scmp.ge.s32.totalorder %s842_s17, 2 }
 0x16b   : > { %s541_s23 = scalar_lea.sflag [#allocation4], %s540_s22 }
 0x16c   : > { %p650_p1 = pnand %p1083_p0, %p929_p11 }
 0x16e   : > { %p651_p3 = pneg %p650_p1 }
 0x170   : > { %817 = dma.done.wait (%p651_p3), %s541_s23, 1024  }
 0x171   : > { %819 = vsyncadd (%p651_p3), %s541_s23, 4294966272  ;;  %s19_s17 = sadd.s32 1, %s842_s17   ;;  %s1084_s12 = smov %s826_s13 }
 0x172   : > { %p16_p5 = scmp.ge.s32.totalorder %s19_s17, 4   ;;  %s1085_s13 = smov %s830_s14 }
 0x173   : > { %s1086_s14 = smov %s927_s26  ;;  %s1087_s15 = smov %s838_s16 }
 0x174   : > { %s1088_s16 = smov %s1090_s20  ;;  %18 = sbr.rel (!%p16_p5) target bundleno = 6 (0x6), region = 77 }
 0x179   :  { %546 = vsyncpa [#allocation3], 1 }
 0x17a   :  { %548 = vsyncpa [#allocation3 + $0x1], 1 }
 0x17b   :  { %549 = vsyncpa [#allocation4], 1 }
 0x17c   :  { %551 = vsyncpa [#allocation4 + $0x1], 1 }

</bundles_post_ra>
